<compile_context>
chip_gen: v5e
topology: v5e:2x2
jax: 0.10.0
libtpu: 0.0.40
codegen_flags: <defaults>
</compile_context>

<pallas_src>
import jax
import jax.numpy as jnp
from jax.experimental import pallas as pl
from jax.experimental.pallas import tpu as pltpu


LANE = 512                       # lane width (multiple of 128)
TARGET_BLOCK_BYTES = 4 << 20     # ~4 MiB per operand per grid step
VMEM_LIMIT_BYTES = 48 << 20      # explicit scoped-VMEM limit (fits v7x 64 MiB)


def _make_partials_kernel(block_rows, lane, rem, use_mxu_fold):
    """Kernel producing per-block (8, lane) partial sums of (x*t, x, t).

    rem: number of valid rows in the last block (0 means all blocks full).
    """
    assert block_rows % 8 == 0 and rem % 8 == 0
    folds = block_rows // 8

    def _fold_vpu(a, valid_folds):
        # (block_rows, lane) -> (folds, 8, lane): layout no-op reshape; the
        # sum over the leading axis is pure VPU adds. Invalid fold groups of
        # the tail block are dropped by a static slice (no mask, no iota).
        a = a.reshape(folds, 8, lane)
        if valid_folds != folds:
            a = a[:valid_folds]
        return jnp.sum(a, axis=0)

    def _emit_vpu(x_raw, t_raw, o_ref, valid_folds):
        x = x_raw.astype(jnp.float32)
        t = t_raw.astype(jnp.float32)
        o_ref[0, 0, :, :] = _fold_vpu(x * t, valid_folds)   # partial TP
        o_ref[0, 1, :, :] = _fold_vpu(x, valid_folds)       # partial sum(x)
        o_ref[0, 2, :, :] = _fold_vpu(t, valid_folds)       # partial sum(t)

    def _emit_mxu(x, t, o_ref):
        # bf16 hot blocks: fold on the MXU so the VALU slot stays free. The
        # all-ones LHS replicates the full column sum into all 8 sublanes;
        # the exact 1/8 rescale keeps the downstream sublane-sum correct.
        ones = jnp.ones((8, block_rows), dtype=x.dtype)
        inv8 = jnp.float32(0.125)
        o_ref[0, 0, :, :] = jnp.dot(ones, x * t,
                                    preferred_element_type=jnp.float32) * inv8
        o_ref[0, 1, :, :] = jnp.dot(ones, x,
                                    preferred_element_type=jnp.float32) * inv8
        o_ref[0, 2, :, :] = jnp.dot(ones, t,
                                    preferred_element_type=jnp.float32) * inv8

    def _emit_hot(x, t, o_ref):
        if use_mxu_fold:
            _emit_mxu(x, t, o_ref)
        else:
            _emit_vpu(x, t, o_ref, folds)

    def kernel(x_ref, t_ref, o_ref):
        x = x_ref[...]
        t = t_ref[...]
        if rem == 0:
            _emit_hot(x, t, o_ref)          # all blocks full: branch-free
        else:
            is_tail = pl.program_id(0) == pl.num_programs(0) - 1

            @pl.when(jnp.logical_not(is_tail))
            def _():
                _emit_hot(x, t, o_ref)

            @pl.when(is_tail)
            def _():
                # Only the first `rem` rows are valid (rem is a multiple of
                # 8); garbage OOB rows are dropped by the static fold slice
                # before any reduction, so NaN/Inf cannot leak into the sums.
                _emit_vpu(x, t, o_ref, rem // 8)

    return kernel


def tversky_loss(inputs, targets, alpha=0.5, beta=0.5, smooth=1.0):
    """Matches TverskyLoss.forward: 1 - (TP+s)/(TP + a*FP + b*FN + s)."""
    if targets.dtype != inputs.dtype:
        targets = targets.astype(inputs.dtype)

    n = inputs.size
    itemsize = inputs.dtype.itemsize
    sub = max(8, 32 // itemsize)          # sublane multiple: 8 f32 / 16 bf16

    # Flatten row-major (same as torch .view(-1)); inputs stay in their native
    # dtype all the way to VMEM (halves HBM traffic for bf16).
    x = inputs.reshape(-1)
    t = targets.reshape(-1)

    # Pad the flat length to a multiple of sub*LANE; the zero pad contributes
    # 0 to all three sums. No-op for typical segmentation shapes.
    chunk = sub * LANE
    rows_p = pl.cdiv(n, chunk) * sub
    n_p = rows_p * LANE
    if n_p != n:
        x = jnp.pad(x, (0, n_p - n))
        t = jnp.pad(t, (0, n_p - n))

    x2 = x.reshape(rows_p, LANE)
    t2 = t.reshape(rows_p, LANE)

    # Dtype-aware block rows: ~TARGET_BLOCK_BYTES per operand per grid step,
    # rounded to the dtype's sublane multiple.
    target_rows = max(sub, (TARGET_BLOCK_BYTES // (LANE * itemsize)) // sub * sub)
    block_rows = min(target_rows, rows_p)
    if block_rows == rows_p and rows_p >= 2 * sub:
        # Whole input fits in one block: split into two blocks so v7x's two
        # TensorCores both get work on the "parallel" grid axis.
        block_rows = ((rows_p // 2 + sub - 1) // sub) * sub

    nb = pl.cdiv(rows_p, block_rows)      # grid steps / partial blocks
    rem = rows_p % block_rows             # valid rows in the tail block
    assert block_rows % 8 == 0 and rem % 8 == 0

    use_mxu_fold = inputs.dtype == jnp.bfloat16

    partials = pl.pallas_call(
        _make_partials_kernel(block_rows, LANE, rem, use_mxu_fold),
        out_shape=jax.ShapeDtypeStruct((nb, 3, 8, LANE), jnp.float32),
        grid_spec=pltpu.PrefetchScalarGridSpec(
            num_scalar_prefetch=0,
            grid=(nb,),
            in_specs=[
                pl.BlockSpec((block_rows, LANE), lambda i: (i, 0)),
                pl.BlockSpec((block_rows, LANE), lambda i: (i, 0)),
            ],
            out_specs=pl.BlockSpec((1, 3, 8, LANE), lambda i: (i, 0, 0, 0)),
        ),
        compiler_params=pltpu.CompilerParams(
            # Disjoint per-step output blocks -> race-free sharding of the
            # single grid axis across both TCs on v7x (no-op on v5e/v6e).
            dimension_semantics=("parallel",),
            vmem_limit_bytes=VMEM_LIMIT_BYTES,
        ),
    )(x2, t2)

    # Tiny final reduction in plain JAX.
    sums = jnp.sum(partials, axis=(0, 2, 3))   # [sum(x*t), sum(x), sum(t)]
    tp = sums[0]
    fp = sums[1] - tp                          # sum((1-t)*x) = sum(x) - TP
    fn = sums[2] - tp                          # sum(t*(1-x)) = sum(t) - TP
    tversky = (tp + smooth) / (tp + alpha * fp + beta * fn + smooth)
    return 1.0 - tversky


def _reference(inputs, targets, alpha=0.5, beta=0.5, smooth=1.0):
    x = inputs.reshape(-1).astype(jnp.float32)
    t = targets.reshape(-1).astype(jnp.float32)
    tp = jnp.sum(x * t)
    fp = jnp.sum((1.0 - t) * x)
    fn = jnp.sum(t * (1.0 - x))
    return 1.0 - (tp + smooth) / (tp + alpha * fp + beta * fn + smooth)


if __name__ == "__main__":
    key = jax.random.PRNGKey(0)
    k1, k2, k3, k4 = jax.random.split(key, 4)

    # 1) NCHW like the PyTorch segmentation module: (B=2, C=4, H=16, W=16), f32.
    x_f32 = jax.nn.sigmoid(jax.random.normal(k1, (2, 4, 16, 16), jnp.float32))
    t_f32 = (jax.random.uniform(k2, (2, 4, 16, 16)) > 0.5).astype(jnp.float32)
    loss = jax.block_until_ready(tversky_loss(x_f32, t_f32))
    ref = _reference(x_f32, t_f32)
    assert jnp.allclose(loss, ref, atol=1e-5, rtol=1e-5), (loss, ref)

    # 2) Awkward f32 size: exercises multi-block grid + the cheap tail path.
    x_odd = jax.nn.sigmoid(jax.random.normal(k3, (2, 4, 33, 64), jnp.float32))
    t_odd = (jax.random.uniform(k4, (2, 4, 33, 64)) > 0.5).astype(jnp.float32)
    loss_odd = jax.block_until_ready(tversky_loss(x_odd, t_odd))
    ref_odd = _reference(x_odd, t_odd)
    assert jnp.allclose(loss_odd, ref_odd, atol=1e-5, rtol=1e-5), (loss_odd, ref_odd)

    # 3) bf16 inputs: exercises the MXU-fold hot path.
    x_bf16 = x_f32.astype(jnp.bfloat16)
    t_bf16 = t_f32.astype(jnp.bfloat16)
    loss_bf = jax.block_until_ready(tversky_loss(x_bf16, t_bf16))
    ref_bf = _reference(x_bf16, t_bf16)
    assert jnp.allclose(loss_bf, ref_bf, atol=1e-3, rtol=1e-3), (loss_bf, ref_bf)

    print("KERNEL_OK")
</pallas_src>

<mosaic_0001>
module attributes {stable_mosaic.version = 11 : i64} {
  func.func @kernel(%arg0: i32, %arg1: memref<8x512xf32, #tpu.memory_space<vmem>>, %arg2: memref<8x512xf32, #tpu.memory_space<vmem>>, %arg3: memref<1x3x8x512xf32, #tpu.memory_space<vmem>>) attributes {dimension_semantics = [#tpu.dimension_semantics<parallel>], iteration_bounds = array<i64: 1>, scalar_prefetch = 0 : i64, scratch_operands = 0 : i64, tpu.core_type = #tpu.core_type<tc>, window_params = [{transform_indices = @transform_0, window_bounds = array<i64: 8, 512>}, {transform_indices = @transform_1, window_bounds = array<i64: 8, 512>}, {transform_indices = @transform_2, window_bounds = array<i64: 1, 3, 8, 512>}]} {
    %c0 = arith.constant 0 : index
    %c0_0 = arith.constant 0 : index
    %0 = vector.load %arg1[%c0, %c0_0] : memref<8x512xf32, #tpu.memory_space<vmem>>, vector<8x512xf32>
    %c0_1 = arith.constant 0 : index
    %c0_2 = arith.constant 0 : index
    %1 = vector.load %arg2[%c0_1, %c0_2] : memref<8x512xf32, #tpu.memory_space<vmem>>, vector<8x512xf32>
    %2 = arith.mulf %0, %1 : vector<8x512xf32>
    %3 = vector.shape_cast %2 : vector<8x512xf32> to vector<1x8x512xf32>
    %cst = arith.constant dense<0.000000e+00> : vector<8x512xf32>
    %4 = vector.multi_reduction <add>, %3, %cst [0] : vector<1x8x512xf32> to vector<8x512xf32>
    %c0_3 = arith.constant 0 : index
    %c0_4 = arith.constant 0 : index
    %c0_5 = arith.constant 0 : index
    %c0_6 = arith.constant 0 : index
    %5 = vector.load %arg3[%c0_3, %c0_4, %c0_5, %c0_6] : memref<1x3x8x512xf32, #tpu.memory_space<vmem>>, vector<1x1x8x512xf32>
    %6 = vector.shape_cast %5 : vector<1x1x8x512xf32> to vector<8x512xf32>
    %7 = vector.shape_cast %4 : vector<8x512xf32> to vector<1x1x8x512xf32>
    tpu.vector_store %arg3[%c0_3, %c0_4, %c0_5, %c0_6], %7 {strides = array<i32>} : memref<1x3x8x512xf32, #tpu.memory_space<vmem>>, vector<1x1x8x512xf32>,
    %8 = vector.shape_cast %0 : vector<8x512xf32> to vector<1x8x512xf32>
    %cst_7 = arith.constant dense<0.000000e+00> : vector<8x512xf32>
    %9 = vector.multi_reduction <add>, %8, %cst_7 [0] : vector<1x8x512xf32> to vector<8x512xf32>
    %c0_8 = arith.constant 0 : index
    %c1 = arith.constant 1 : index
    %c0_9 = arith.constant 0 : index
    %c0_10 = arith.constant 0 : index
    %10 = vector.load %arg3[%c0_8, %c1, %c0_9, %c0_10] : memref<1x3x8x512xf32, #tpu.memory_space<vmem>>, vector<1x1x8x512xf32>
    %11 = vector.shape_cast %10 : vector<1x1x8x512xf32> to vector<8x512xf32>
    %12 = vector.shape_cast %9 : vector<8x512xf32> to vector<1x1x8x512xf32>
    tpu.vector_store %arg3[%c0_8, %c1, %c0_9, %c0_10], %12 {strides = array<i32>} : memref<1x3x8x512xf32, #tpu.memory_space<vmem>>, vector<1x1x8x512xf32>,
    %13 = vector.shape_cast %1 : vector<8x512xf32> to vector<1x8x512xf32>
    %cst_11 = arith.constant dense<0.000000e+00> : vector<8x512xf32>
    %14 = vector.multi_reduction <add>, %13, %cst_11 [0] : vector<1x8x512xf32> to vector<8x512xf32>
    %c0_12 = arith.constant 0 : index
    %c2 = arith.constant 2 : index
    %c0_13 = arith.constant 0 : index
    %c0_14 = arith.constant 0 : index
    %15 = vector.load %arg3[%c0_12, %c2, %c0_13, %c0_14] : memref<1x3x8x512xf32, #tpu.memory_space<vmem>>, vector<1x1x8x512xf32>
    %16 = vector.shape_cast %15 : vector<1x1x8x512xf32> to vector<8x512xf32>
    %17 = vector.shape_cast %14 : vector<8x512xf32> to vector<1x1x8x512xf32>
    tpu.vector_store %arg3[%c0_12, %c2, %c0_13, %c0_14], %17 {strides = array<i32>} : memref<1x3x8x512xf32, #tpu.memory_space<vmem>>, vector<1x1x8x512xf32>,
    return
  }
  func.func @transform_0(%arg0: i32) -> (i32, i32) {
    %c0_i32 = arith.constant 0 : i32
    %c0_i32_0 = arith.constant 0 : i32
    return %arg0, %c0_i32 : i32, i32
  }
  func.func @transform_1(%arg0: i32) -> (i32, i32) {
    %c0_i32 = arith.constant 0 : i32
    %c0_i32_0 = arith.constant 0 : i32
    return %arg0, %c0_i32 : i32, i32
  }
  func.func @transform_2(%arg0: i32) -> (i32, i32, i32, i32) {
    %c0_i32 = arith.constant 0 : i32
    %c0_i32_0 = arith.constant 0 : i32
    %c0_i32_1 = arith.constant 0 : i32
    %c0_i32_2 = arith.constant 0 : i32
    return %arg0, %c0_i32, %c0_i32_0, %c0_i32_1 : i32, i32, i32, i32
  }
}

</mosaic_0001>

<bundles_post_ra>
// kernel: tpu_custom_call.1
= control target key start
LH: loop header
LB: loop body
LE: loop exit
PB: predicated region body
PF: predicated region fallthrough
CT: control target
= control target key end

     0   :  { %7 = vsyncpa [#allocation3], 0  ;;  %s210_s0 = inlined_call_operand.hbm [shape: f32[8,512], index: 0, kind: input, shape index: {}]   ;;  %s211_s1 = inlined_call_operand.hbm [shape: f32[8,512], index: 1, kind: input, shape index: {}]   ;;  %s212_s2 = inlined_call_operand.hbm [shape: f32[1,3,8,512], index: 2, kind: output, shape index: {}]  }
   0x1   :  { %8 = vsyncpa [#allocation6], 0 }
   0x2   :  { %9 = vsyncpa [#allocation4], 0  ;;  %s15_s11 = sshll.u32 %s210_s0, 4  ;;  %s181_s12 = smov [#allocation2]   ;;  %s16_s11 = int_to_ptr.hbm [resolvable:$true] %s15_s11 }
   0x3   :  { %s17_s13 = sshll.u32 %s181_s12, 4  ;;  %s26_s16 = sshll.u32 %s211_s1, 4  ;;  %s18_s13 = int_to_ptr.vmem [resolvable:$true] %s17_s13  ;;  %s27_s16 = int_to_ptr.hbm [resolvable:$true] %s26_s16 }
   0x4   :  { %20 = dma.hbm_to_vmem [thread:$0]  %s16_s11, 512, %s18_s13, [#allocation3]  }
   0x5   :  { %s182_s17 = smov [#allocation5]  }
   0x6   :  { %s28_s18 = sshll.u32 %s182_s17, 4  ;;  %s29_s18 = int_to_ptr.vmem [resolvable:$true] %s28_s18 }
   0x7   :  { %31 = dma.hbm_to_vmem [thread:$0]  %s27_s16, 512, %s29_s18, [#allocation6]  }
   0x8   :  { %175 = dma.done.wait [#allocation3], 512  }
   0x9   :  { %176 = vsyncadd [#allocation3], 4294966784 }
   0xa   :  { %177 = dma.done.wait [#allocation6], 512  }
   0xb   :  { %178 = vsyncadd [#allocation6], 4294966784  ;;  %v40_v0 = vld [vmem:[#allocation2] sm:$0xff]  ;;  %v41_v2 = vld [vmem:[#allocation2 + $0x8] sm:$0xff]  ;;  %s183_s0 = smov [#allocation7]   ;;  %s84_s21 = sshll.u32 %s212_s2, 4  ;;  %s85_s21 = int_to_ptr.hbm [resolvable:$true] %s84_s21 }
   0xc   :  { %v44_v1 = vld [vmem:[#allocation5] sm:$0xff]  ;;  %65 = vst [vmem:[#allocation7 + $0x20] sm:$0xff] %v40_v0  ;;  %v45_v4 = vld [vmem:[#allocation5 + $0x8] sm:$0xff]  ;;  %v42_v5 = vld [vmem:[#allocation2 + $0x10] sm:$0xff]  ;;  %s82_s1 = sshll.u32 %s183_s0, 4  ;;  %s184_s22 = smov 512   ;;  %s83_s1 = int_to_ptr.vmem [resolvable:$true] %s82_s1 }
   0xd   :  { %v48_v3 = vmul.f32 %v44_v1, %v40_v0  ;;  %v46_v6 = vld [vmem:[#allocation5 + $0x10] sm:$0xff]  ;;  %74 = vst [vmem:[#allocation7 + $0x40] sm:$0xff] %v44_v1  ;;  %v49_v7 = vmul.f32 %v45_v4, %v41_v2  ;;  %v43_v9 = vld [vmem:[#allocation2 + $0x18] sm:$0xff]  ;;  %s185_s23 = smov 32  }
   0xe   :  { %v50_v8 = vmul.f32 %v46_v6, %v42_v5  ;;  %v47_v10 = vld [vmem:[#allocation5 + $0x18] sm:$0xff]  ;;  %66 = vst [vmem:[#allocation7 + $0x28] sm:$0xff] %v41_v2 }
   0xf   :  { %56 = vst [vmem:[#allocation7] sm:$0xff] %v48_v3  ;;  %v51_v11 = vmul.f32 %v47_v10, %v43_v9 }
  0x10   :  { %57 = vst [vmem:[#allocation7 + $0x8] sm:$0xff] %v49_v7 }
  0x11   :  { %75 = vst [vmem:[#allocation7 + $0x48] sm:$0xff] %v45_v4 }
  0x12   :  { %58 = vst [vmem:[#allocation7 + $0x10] sm:$0xff] %v50_v8 }
  0x13   :  { %67 = vst [vmem:[#allocation7 + $0x30] sm:$0xff] %v42_v5 }
  0x14   :  { %76 = vst [vmem:[#allocation7 + $0x50] sm:$0xff] %v46_v6 }
  0x15   :  { %59 = vst [vmem:[#allocation7 + $0x18] sm:$0xff] %v51_v11 }
  0x16   :  { %68 = vst [vmem:[#allocation7 + $0x38] sm:$0xff] %v43_v9 }
  0x17   :  { %77 = vst [vmem:[#allocation7 + $0x58] sm:$0xff] %v47_v10 }
  0x18   :  { %90 = dma.vmem_to_hbm [thread:$0]  %s83_s1, 1536, %s85_s21, [#allocation4], %s184_s22, %s184_s22, %s185_s23  }
  0x19   :  { %179 = dma.done.wait [#allocation4], 1536  }
  0x1a   :  { %180 = vsyncadd [#allocation4], 4294965760 }
  0x1b   :  { %95 = vsyncpa [#allocation3], 1 }
  0x1c   :  { %96 = vsyncpa [#allocation6], 1 }
  0x1d   :  { %97 = vsyncpa [#allocation4], 1 }

</bundles_post_ra>
